<compile_context>
chip_gen: v7x
topology: tpu7x:2x2x1
jax: 0.10.0
libtpu: 0.0.40
codegen_flags: <defaults>
</compile_context>

<pallas_src>
import functools
import math

import numpy as np
import jax
import jax.numpy as jnp
from jax import lax
from jax.experimental import pallas as pl
from jax.experimental.pallas import tpu as pltpu

_PI = math.pi
_TAN_3PI_8 = 2.414213562373095
_TAN_PI_8 = 0.4142135623730951


# ---------------------------------------------------------------------------
# Host-side operator construction (small (H,H)/(W,W) banded matrices).
# ---------------------------------------------------------------------------
def _triangular_weights(r):
    # Deterministic triangular kernel [1..r, r+1, r..1] from the module __init__.
    return [float(v) for v in list(range(1, r + 1)) + [r + 1] + list(range(r, 0, -1))]


def _reflect(p, n):
    if p < 0:
        return -p
    if p >= n:
        return 2 * n - 2 - p
    return p


def _conv_matrix(n, r):
    """Left-form matrix C (n,n): C @ M == 'same' conv with reflect padding along rows."""
    w = _triangular_weights(r)
    C = np.zeros((n, n), np.float64)
    for v in range(n):
        for k, wk in enumerate(w):
            C[v, _reflect(v + k - r, n)] += wk
    return C


def _grad_matrix(n):
    """Left-form matrix G (n,n): G @ M == torch.gradient (spacing=1, edge_order=1)."""
    G = np.zeros((n, n), np.float64)
    for v in range(1, n - 1):
        G[v, v - 1] = -0.5
        G[v, v + 1] = 0.5
    G[0, 0], G[0, 1] = -1.0, 1.0
    G[n - 1, n - 2], G[n - 1, n - 1] = -1.0, 1.0
    return G


# ---------------------------------------------------------------------------
# In-kernel elementwise helpers (EUP reciprocal + 1 Newton step, no f32 divide).
# ---------------------------------------------------------------------------
def _sign(x):
    one = jnp.float32(1.0)
    return jnp.where(x > 0, one, jnp.where(x < 0, -one, jnp.float32(0.0)))


def _recip(x):
    r0 = pl.reciprocal(x, approx=True)
    return r0 * (2.0 - x * r0)            # one Newton-Raphson refinement


def _safe_recip(x, eps=1e-30):
    # Clamp |x| away from 0 so vrcp(0)=inf followed by the Newton step cannot
    # produce inf*0 -> NaN; the reference's true divide gives +-inf -> atan ->
    # +-pi/2, which the clamped huge ratio reproduces.
    xs = jnp.where(jnp.abs(x) < eps, jnp.where(x < 0, -eps, eps), x)
    return _recip(xs)


def _atan(x):
    # Cephes-style float32 arctangent; the two branch reductions share a single
    # numerator/denominator pair so only one reciprocal is needed.
    ax = jnp.abs(x)
    big = ax > _TAN_3PI_8
    mid = jnp.logical_and(ax > _TAN_PI_8, jnp.logical_not(big))
    num = jnp.where(big, jnp.float32(-1.0), jnp.where(mid, ax - 1.0, ax))
    den = jnp.where(big, ax, jnp.where(mid, ax + 1.0, jnp.float32(1.0)))
    xr = num * _recip(den)                # den >= 1 always, never 0
    off = jnp.where(big, jnp.float32(_PI / 2),
                    jnp.where(mid, jnp.float32(_PI / 4), jnp.float32(0.0)))
    z = xr * xr
    p = (((8.05374449538e-2 * z - 1.38776856032e-1) * z + 1.99777106478e-1) * z
         - 3.33329491539e-1)
    return _sign(x) * (off + (p * z * xr + xr))


# ---------------------------------------------------------------------------
# Pallas kernel: one (Bt, H, W) batch tile per grid step.
# ---------------------------------------------------------------------------
def _orientation_kernel(x_ref, rc_ref, rg_ref, rgg_ref, lc_ref, lg_ref, out_ref,
                        *, precision):
    f32 = jnp.float32
    bt, H, W = x_ref.shape
    flat_ok = (H % 8) == 0    # (bt,H,W) <-> (bt*H,W) reshape is layout-preserving

    def rmul(a, m_ref):
        """Apply a (W, W) operator along the last axis of a (bt, H, W) array."""
        m = m_ref[...]
        if flat_ok:
            # Fold (bt, H) into the MXU M dimension: one fat 2-D matmul.
            y = jnp.dot(a.reshape(bt * H, W), m, precision=precision,
                        preferred_element_type=f32)
            return y.reshape(bt, H, W)
        mb = jnp.broadcast_to(m[None], (bt, W, W))
        return jnp.einsum("bhw,bwv->bhv", a, mb, precision=precision,
                          preferred_element_type=f32)

    # Left (along-H) operators: broadcast in VMEM only (no duplicated HBM
    # traffic).  Hoisted once per grid step — JAX does not CSE broadcast_in_dim.
    lcb = jnp.broadcast_to(lc_ref[...][None], (bt, H, H))
    lgb = jnp.broadcast_to(lg_ref[...][None], (bt, H, H))

    def lmul(mb, a):
        return jnp.einsum("bhk,bkw->bhw", mb, a, precision=precision,
                          preferred_element_type=f32)

    x = x_ref[...]                       # (bt, H, W) f32
    s1 = rmul(x, rc_ref)                 # conv1 along W (reflect folded into matrix)
    s2 = lmul(lcb, s1)                   # conv2 along H
    ori_xx = rmul(s2, rgg_ref)           # d2/dx2
    ori_y = lmul(lgb, s2)                # d/dy
    ori_xy = rmul(ori_y, rg_ref)         # d/dx of d/dy
    ori_yy = lmul(lgb, ori_y)            # d2/dy2

    ratio = ori_yy * _sign(-ori_xy) * _safe_recip(ori_xx + 1e-5)
    v = _atan(ratio)                     # in (-pi/2, pi/2]
    # v % pi  ==  v + pi where v < 0 (since |v| <= pi/2)
    out_ref[...] = jnp.where(v < 0, v + _PI, v).astype(out_ref.dtype)


# ---------------------------------------------------------------------------
# VMEM planning + wrapper.
# ---------------------------------------------------------------------------
def _vmem_plan():
    """Return (tile budget bytes, scoped vmem_limit_bytes) for this TPU gen."""
    kind = ""
    try:
        kind = jax.devices()[0].device_kind.lower()
    except Exception:
        pass
    if ("v2" in kind) or ("v3" in kind):
        return 8 << 20, 14 << 20           # 16 MiB physical VMEM
    if ("v4" in kind) or ("v5" in kind) or ("v6" in kind):
        return 72 << 20, 100 << 20         # 128 MiB physical VMEM
    # v7x (64 MiB per TensorCore) and unknown chips: stay conservative.
    return 32 << 20, 48 << 20


def _pick_block_batch(n, h, w, const_bytes, budget_bytes):
    # Per image in the tile: double-buffered input + output blocks (2 + 2) plus
    # roughly 8 live full-tile f32 intermediates inside the kernel body.
    per_image = h * w * 4 * 12
    avail = max(budget_bytes - 2 * const_bytes, per_image)
    cap = max(1, avail // per_image)
    # Keep >= 2 grid steps so the "parallel" axis can shard across TensorCores
    # (v7x megacore); costs only ~0.35 us of extra per-step overhead on 1-TC chips.
    cap = min(cap, max(1, n // 2))
    bt = 1
    for d in range(1, n + 1):
        if n % d == 0 and d <= cap:
            bt = d
    return bt


def orientation_pallas(x, r, block_batch=None, precision=lax.Precision.HIGHEST,
                       single_buffer_constants=False):
    N, C, H, W = x.shape
    assert C == 1, "Orientation operates on single-channel images"
    assert 1 <= r <= min(H, W) - 1

    c_h = _conv_matrix(H, r)
    c_w = _conv_matrix(W, r)
    g_h = _grad_matrix(H)
    g_w = _grad_matrix(W)

    rc = jnp.asarray(c_w.T, jnp.float32)             # conv along W   (right form)
    rg = jnp.asarray(g_w.T, jnp.float32)             # d/dx           (right form)
    rgg = jnp.asarray((g_w @ g_w).T, jnp.float32)    # d2/dx2         (right form)
    lc = jnp.asarray(c_h, jnp.float32)               # conv along H   (left form)
    lg = jnp.asarray(g_h, jnp.float32)               # d/dy           (left form)

    const_bytes = (3 * W * W + 2 * H * H) * 4
    budget, vmem_limit = _vmem_plan()
    bt = (block_batch if block_batch is not None
          else _pick_block_batch(N, H, W, const_bytes, budget))
    assert N % bt == 0, "block_batch must divide the batch size"

    x3 = x.reshape(N, H, W).astype(jnp.float32)      # squeeze channel (free)

    const_idx = lambda b: (0, 0)
    ckw = {}
    if single_buffer_constants:
        # Constants have a constant index_map (fetched once); single-buffering
        # halves the VMEM they hold — useful for large H/W on v7x.
        ckw = dict(pipeline_mode=pl.Buffered(1))

    def cspec(n):
        return pl.BlockSpec((n, n), const_idx, **ckw)

    kernel = functools.partial(_orientation_kernel, precision=precision)
    out = pl.pallas_call(
        kernel,
        out_shape=jax.ShapeDtypeStruct((N, H, W), jnp.float32),
        grid=(N // bt,),
        in_specs=[
            pl.BlockSpec((bt, H, W), lambda b: (b, 0, 0)),
            cspec(W), cspec(W), cspec(W), cspec(H), cspec(H),
        ],
        out_specs=pl.BlockSpec((bt, H, W), lambda b: (b, 0, 0)),
        compiler_params=pltpu.CompilerParams(
            dimension_semantics=("parallel",),
            vmem_limit_bytes=vmem_limit),
    )(x3, rc, rg, rgg, lc, lg)
    return out.reshape(N, 1, H, W)


# ---------------------------------------------------------------------------
# Pure-JAX reference (same math, XLA ops) used only for the correctness check.
# ---------------------------------------------------------------------------
def orientation_ref(x, r):
    N, C, H, W = x.shape
    ks = 2 * r + 1
    w = jnp.asarray(_triangular_weights(r), jnp.float32)
    xp = jnp.pad(x.astype(jnp.float32), ((0, 0), (0, 0), (r, r), (r, r)), mode="reflect")
    s1 = sum(w[k] * xp[:, :, :, k:k + W] for k in range(ks))
    s2 = sum(w[k] * s1[:, :, k:k + H, :] for k in range(ks))
    ori_y, ori_x = jnp.gradient(s2, axis=(2, 3))
    ori_xx = jnp.gradient(ori_x, axis=3)
    ori_yy, ori_xy = jnp.gradient(ori_y, axis=(2, 3))
    return jnp.mod(jnp.arctan(ori_yy * jnp.sign(-ori_xy) / (ori_xx + 1e-05)), jnp.pi)


def _check(x, r, block_batch=None, tol=2e-3):
    out = orientation_pallas(x, r, block_batch=block_batch)
    jax.block_until_ready(out)
    assert out.shape == x.shape
    ref = orientation_ref(x, r)
    d = jnp.abs(out - ref)
    d = jnp.minimum(d, jnp.float32(_PI) - d)   # circular distance modulo pi
    err = float(jnp.max(d))
    assert err < tol, f"max circular error {err}"


if __name__ == "__main__":
    key = jax.random.PRNGKey(0)
    k1, k2 = jax.random.split(key)

    # Primary config: batch=2, channels=1, 16x16 image, r=2 (kernel_size=5).
    x1 = jax.random.normal(k1, (2, 1, 16, 16), dtype=jnp.float32)
    _check(x1, r=2)

    # Second config exercising auto tile selection (grid of 2 steps, bt=2).
    x2 = jax.random.normal(k2, (4, 1, 8, 32), dtype=jnp.float32)
    _check(x2, r=1)

    print("KERNEL_OK")
</pallas_src>

<mosaic_0001>
module attributes {stable_mosaic.version = 11 : i64} {
  func.func @_orientation_kernel(%arg0: i32, %arg1: memref<1x16x16xf32, #tpu.memory_space<vmem>>, %arg2: memref<16x16xf32, #tpu.memory_space<vmem>>, %arg3: memref<16x16xf32, #tpu.memory_space<vmem>>, %arg4: memref<16x16xf32, #tpu.memory_space<vmem>>, %arg5: memref<16x16xf32, #tpu.memory_space<vmem>>, %arg6: memref<16x16xf32, #tpu.memory_space<vmem>>, %arg7: memref<1x16x16xf32, #tpu.memory_space<vmem>>) attributes {dimension_semantics = [#tpu.dimension_semantics<parallel>], iteration_bounds = array<i64: 2>, scalar_prefetch = 0 : i64, scratch_operands = 0 : i64, tpu.core_type = #tpu.core_type<tc>, window_params = [{transform_indices = @transform_0, window_bounds = array<i64: 1, 16, 16>}, {pipeline_mode = #tpu.pipeline_mode<synchronous>, transform_indices = @transform_1, window_bounds = array<i64: 16, 16>}, {pipeline_mode = #tpu.pipeline_mode<synchronous>, transform_indices = @transform_2, window_bounds = array<i64: 16, 16>}, {pipeline_mode = #tpu.pipeline_mode<synchronous>, transform_indices = @transform_3, window_bounds = array<i64: 16, 16>}, {pipeline_mode = #tpu.pipeline_mode<synchronous>, transform_indices = @transform_4, window_bounds = array<i64: 16, 16>}, {pipeline_mode = #tpu.pipeline_mode<synchronous>, transform_indices = @transform_5, window_bounds = array<i64: 16, 16>}, {transform_indices = @transform_6, window_bounds = array<i64: 1, 16, 16>}]} {
    %c0 = arith.constant 0 : index
    %c0_0 = arith.constant 0 : index
    %0 = vector.load %arg5[%c0, %c0_0] : memref<16x16xf32, #tpu.memory_space<vmem>>, vector<16x16xf32>
    %1 = vector.shape_cast %0 : vector<16x16xf32> to vector<1x16x16xf32>
    %c0_1 = arith.constant 0 : index
    %c0_2 = arith.constant 0 : index
    %2 = vector.load %arg6[%c0_1, %c0_2] : memref<16x16xf32, #tpu.memory_space<vmem>>, vector<16x16xf32>
    %3 = vector.shape_cast %2 : vector<16x16xf32> to vector<1x16x16xf32>
    %c0_3 = arith.constant 0 : index
    %c0_4 = arith.constant 0 : index
    %c0_5 = arith.constant 0 : index
    %4 = vector.load %arg1[%c0_3, %c0_4, %c0_5] : memref<1x16x16xf32, #tpu.memory_space<vmem>>, vector<1x16x16xf32>
    %c0_6 = arith.constant 0 : index
    %c0_7 = arith.constant 0 : index
    %5 = vector.load %arg2[%c0_6, %c0_7] : memref<16x16xf32, #tpu.memory_space<vmem>>, vector<16x16xf32>
    %6 = vector.shape_cast %4 : vector<1x16x16xf32> to vector<16x16xf32>
    %cst = arith.constant dense<0.000000e+00> : vector<16x16xf32>
    %7 = tpu.matmul %6, %5, %cst {dimension_numbers = #tpu.dot_dimension_numbers<[1], [0], [0], [1], [0, 0, 1, 1], [], []>, precision = #tpu.contract_precision<fp32>} : vector<16x16xf32>, vector<16x16xf32>, vector<16x16xf32> -> vector<16x16xf32>
    %8 = vector.shape_cast %7 : vector<16x16xf32> to vector<1x16x16xf32>
    "tpu.trace_start"() <{level = 10 : i32, message = "bhk,bkw->bhw"}> : () -> ()
    %cst_8 = arith.constant dense<0.000000e+00> : vector<1x16x16xf32>
    %9 = tpu.matmul %1, %8, %cst_8 {dimension_numbers = #tpu.dot_dimension_numbers<[2], [1], [1], [2], [0, 0, 0, 1, 1, 2], [0], [0]>, precision = #tpu.contract_precision<fp32>} : vector<1x16x16xf32>, vector<1x16x16xf32>, vector<1x16x16xf32> -> vector<1x16x16xf32>
    "tpu.trace_stop"() : () -> ()
    %c0_9 = arith.constant 0 : index
    %c0_10 = arith.constant 0 : index
    %10 = vector.load %arg4[%c0_9, %c0_10] : memref<16x16xf32, #tpu.memory_space<vmem>>, vector<16x16xf32>
    %11 = vector.shape_cast %9 : vector<1x16x16xf32> to vector<16x16xf32>
    %cst_11 = arith.constant dense<0.000000e+00> : vector<16x16xf32>
    %12 = tpu.matmul %11, %10, %cst_11 {dimension_numbers = #tpu.dot_dimension_numbers<[1], [0], [0], [1], [0, 0, 1, 1], [], []>, precision = #tpu.contract_precision<fp32>} : vector<16x16xf32>, vector<16x16xf32>, vector<16x16xf32> -> vector<16x16xf32>
    %13 = vector.shape_cast %12 : vector<16x16xf32> to vector<1x16x16xf32>
    "tpu.trace_start"() <{level = 10 : i32, message = "bhk,bkw->bhw"}> : () -> ()
    %cst_12 = arith.constant dense<0.000000e+00> : vector<1x16x16xf32>
    %14 = tpu.matmul %3, %9, %cst_12 {dimension_numbers = #tpu.dot_dimension_numbers<[2], [1], [1], [2], [0, 0, 0, 1, 1, 2], [0], [0]>, precision = #tpu.contract_precision<fp32>} : vector<1x16x16xf32>, vector<1x16x16xf32>, vector<1x16x16xf32> -> vector<1x16x16xf32>
    "tpu.trace_stop"() : () -> ()
    %c0_13 = arith.constant 0 : index
    %c0_14 = arith.constant 0 : index
    %15 = vector.load %arg3[%c0_13, %c0_14] : memref<16x16xf32, #tpu.memory_space<vmem>>, vector<16x16xf32>
    %16 = vector.shape_cast %14 : vector<1x16x16xf32> to vector<16x16xf32>
    %cst_15 = arith.constant dense<0.000000e+00> : vector<16x16xf32>
    %17 = tpu.matmul %16, %15, %cst_15 {dimension_numbers = #tpu.dot_dimension_numbers<[1], [0], [0], [1], [0, 0, 1, 1], [], []>, precision = #tpu.contract_precision<fp32>} : vector<16x16xf32>, vector<16x16xf32>, vector<16x16xf32> -> vector<16x16xf32>
    %18 = vector.shape_cast %17 : vector<16x16xf32> to vector<1x16x16xf32>
    "tpu.trace_start"() <{level = 10 : i32, message = "bhk,bkw->bhw"}> : () -> ()
    %cst_16 = arith.constant dense<0.000000e+00> : vector<1x16x16xf32>
    %19 = tpu.matmul %3, %14, %cst_16 {dimension_numbers = #tpu.dot_dimension_numbers<[2], [1], [1], [2], [0, 0, 0, 1, 1, 2], [0], [0]>, precision = #tpu.contract_precision<fp32>} : vector<1x16x16xf32>, vector<1x16x16xf32>, vector<1x16x16xf32> -> vector<1x16x16xf32>
    "tpu.trace_stop"() : () -> ()
    %cst_17 = arith.constant 0.000000e+00 : f32
    %20 = vector.broadcast %cst_17 : f32 to vector<1x16x16xf32>
    %21 = arith.subf %20, %18 : vector<1x16x16xf32>
    %cst_18 = arith.constant 0.000000e+00 : f32
    %22 = vector.broadcast %cst_18 : f32 to vector<1x16x16xf32>
    %23 = arith.cmpf ogt, %21, %22 : vector<1x16x16xf32>
    %cst_19 = arith.constant 0.000000e+00 : f32
    %24 = vector.broadcast %cst_19 : f32 to vector<1x16x16xf32>
    %25 = arith.cmpf olt, %21, %24 : vector<1x16x16xf32>
    %cst_20 = arith.constant 0.000000e+00 : f32
    %cst_21 = arith.constant 1.000000e+00 : f32
    %26 = arith.subf %cst_20, %cst_21 : f32
    %cst_22 = arith.constant 0.000000e+00 : f32
    %27 = vector.broadcast %26 : f32 to vector<1x16x16xf32>
    %28 = vector.broadcast %cst_22 : f32 to vector<1x16x16xf32>
    %29 = arith.select %25, %27, %28 : vector<1x16x16xi1>, vector<1x16x16xf32>
    %cst_23 = arith.constant 1.000000e+00 : f32
    %30 = vector.broadcast %cst_23 : f32 to vector<1x16x16xf32>
    %31 = arith.select %23, %30, %29 : vector<1x16x16xi1>, vector<1x16x16xf32>
    %32 = arith.mulf %19, %31 : vector<1x16x16xf32>
    %cst_24 = arith.constant 9.99999974E-6 : f32
    %33 = vector.broadcast %cst_24 : f32 to vector<1x16x16xf32>
    %34 = arith.addf %13, %33 : vector<1x16x16xf32>
    %35 = math.absf %34 : vector<1x16x16xf32>
    %cst_25 = arith.constant 1.000000e-30 : f32
    %36 = vector.broadcast %cst_25 : f32 to vector<1x16x16xf32>
    %37 = arith.cmpf olt, %35, %36 : vector<1x16x16xf32>
    %cst_26 = arith.constant 0.000000e+00 : f32
    %38 = vector.broadcast %cst_26 : f32 to vector<1x16x16xf32>
    %39 = arith.cmpf olt, %34, %38 : vector<1x16x16xf32>
    %cst_27 = arith.constant -1.000000e-30 : f32
    %cst_28 = arith.constant 1.000000e-30 : f32
    %40 = vector.broadcast %cst_27 : f32 to vector<1x16x16xf32>
    %41 = vector.broadcast %cst_28 : f32 to vector<1x16x16xf32>
    %42 = arith.select %39, %40, %41 : vector<1x16x16xi1>, vector<1x16x16xf32>
    %43 = arith.select %37, %42, %34 : vector<1x16x16xi1>, vector<1x16x16xf32>
    %44 = tpu.reciprocal %43 {approx = true} : vector<1x16x16xf32> -> vector<1x16x16xf32>
    %45 = arith.mulf %43, %44 : vector<1x16x16xf32>
    %cst_29 = arith.constant 2.000000e+00 : f32
    %46 = vector.broadcast %cst_29 : f32 to vector<1x16x16xf32>
    %47 = arith.subf %46, %45 : vector<1x16x16xf32>
    %48 = arith.mulf %44, %47 : vector<1x16x16xf32>
    %49 = arith.mulf %32, %48 : vector<1x16x16xf32>
    %50 = math.absf %49 : vector<1x16x16xf32>
    %cst_30 = arith.constant 2.41421366 : f32
    %51 = vector.broadcast %cst_30 : f32 to vector<1x16x16xf32>
    %52 = arith.cmpf ogt, %50, %51 : vector<1x16x16xf32>
    %cst_31 = arith.constant 0.414213568 : f32
    %53 = vector.broadcast %cst_31 : f32 to vector<1x16x16xf32>
    %54 = arith.cmpf ogt, %50, %53 : vector<1x16x16xf32>
    %cst_32 = arith.constant dense<true> : vector<1x16x16xi1>
    %55 = arith.xori %52, %cst_32 : vector<1x16x16xi1>
    %56 = arith.andi %54, %55 : vector<1x16x16xi1>
    %cst_33 = arith.constant 1.000000e+00 : f32
    %57 = vector.broadcast %cst_33 : f32 to vector<1x16x16xf32>
    %58 = arith.subf %50, %57 : vector<1x16x16xf32>
    %59 = arith.select %56, %58, %50 : vector<1x16x16xi1>, vector<1x16x16xf32>
    %cst_34 = arith.constant -1.000000e+00 : f32
    %60 = vector.broadcast %cst_34 : f32 to vector<1x16x16xf32>
    %61 = arith.select %52, %60, %59 : vector<1x16x16xi1>, vector<1x16x16xf32>
    %cst_35 = arith.constant 1.000000e+00 : f32
    %62 = vector.broadcast %cst_35 : f32 to vector<1x16x16xf32>
    %63 = arith.addf %50, %62 : vector<1x16x16xf32>
    %cst_36 = arith.constant 1.000000e+00 : f32
    %64 = vector.broadcast %cst_36 : f32 to vector<1x16x16xf32>
    %65 = arith.select %56, %63, %64 : vector<1x16x16xi1>, vector<1x16x16xf32>
    %66 = arith.select %52, %50, %65 : vector<1x16x16xi1>, vector<1x16x16xf32>
    %67 = tpu.reciprocal %66 {approx = true} : vector<1x16x16xf32> -> vector<1x16x16xf32>
    %68 = arith.mulf %66, %67 : vector<1x16x16xf32>
    %cst_37 = arith.constant 2.000000e+00 : f32
    %69 = vector.broadcast %cst_37 : f32 to vector<1x16x16xf32>
    %70 = arith.subf %69, %68 : vector<1x16x16xf32>
    %71 = arith.mulf %67, %70 : vector<1x16x16xf32>
    %72 = arith.mulf %61, %71 : vector<1x16x16xf32>
    %cst_38 = arith.constant 0.785398185 : f32
    %cst_39 = arith.constant 0.000000e+00 : f32
    %73 = vector.broadcast %cst_38 : f32 to vector<1x16x16xf32>
    %74 = vector.broadcast %cst_39 : f32 to vector<1x16x16xf32>
    %75 = arith.select %56, %73, %74 : vector<1x16x16xi1>, vector<1x16x16xf32>
    %cst_40 = arith.constant 1.57079637 : f32
    %76 = vector.broadcast %cst_40 : f32 to vector<1x16x16xf32>
    %77 = arith.select %52, %76, %75 : vector<1x16x16xi1>, vector<1x16x16xf32>
    %78 = arith.mulf %72, %72 : vector<1x16x16xf32>
    %cst_41 = arith.constant 0.0805374458 : f32
    %79 = vector.broadcast %cst_41 : f32 to vector<1x16x16xf32>
    %80 = arith.mulf %79, %78 : vector<1x16x16xf32>
    %cst_42 = arith.constant 0.138776854 : f32
    %81 = vector.broadcast %cst_42 : f32 to vector<1x16x16xf32>
    %82 = arith.subf %80, %81 : vector<1x16x16xf32>
    %83 = arith.mulf %82, %78 : vector<1x16x16xf32>
    %cst_43 = arith.constant 0.199777111 : f32
    %84 = vector.broadcast %cst_43 : f32 to vector<1x16x16xf32>
    %85 = arith.addf %83, %84 : vector<1x16x16xf32>
    %86 = arith.mulf %85, %78 : vector<1x16x16xf32>
    %cst_44 = arith.constant 0.333329499 : f32
    %87 = vector.broadcast %cst_44 : f32 to vector<1x16x16xf32>
    %88 = arith.subf %86, %87 : vector<1x16x16xf32>
    %cst_45 = arith.constant 0.000000e+00 : f32
    %89 = vector.broadcast %cst_45 : f32 to vector<1x16x16xf32>
    %90 = arith.cmpf ogt, %49, %89 : vector<1x16x16xf32>
    %cst_46 = arith.constant 0.000000e+00 : f32
    %91 = vector.broadcast %cst_46 : f32 to vector<1x16x16xf32>
    %92 = arith.cmpf olt, %49, %91 : vector<1x16x16xf32>
    %cst_47 = arith.constant 0.000000e+00 : f32
    %cst_48 = arith.constant 1.000000e+00 : f32
    %93 = arith.subf %cst_47, %cst_48 : f32
    %cst_49 = arith.constant 0.000000e+00 : f32
    %94 = vector.broadcast %93 : f32 to vector<1x16x16xf32>
    %95 = vector.broadcast %cst_49 : f32 to vector<1x16x16xf32>
    %96 = arith.select %92, %94, %95 : vector<1x16x16xi1>, vector<1x16x16xf32>
    %cst_50 = arith.constant 1.000000e+00 : f32
    %97 = vector.broadcast %cst_50 : f32 to vector<1x16x16xf32>
    %98 = arith.select %90, %97, %96 : vector<1x16x16xi1>, vector<1x16x16xf32>
    %99 = arith.mulf %88, %78 : vector<1x16x16xf32>
    %100 = arith.mulf %99, %72 : vector<1x16x16xf32>
    %101 = arith.addf %100, %72 : vector<1x16x16xf32>
    %102 = arith.addf %77, %101 : vector<1x16x16xf32>
    %103 = arith.mulf %98, %102 : vector<1x16x16xf32>
    %cst_51 = arith.constant 0.000000e+00 : f32
    %104 = vector.broadcast %cst_51 : f32 to vector<1x16x16xf32>
    %105 = arith.cmpf olt, %103, %104 : vector<1x16x16xf32>
    %cst_52 = arith.constant 3.14159274 : f32
    %106 = vector.broadcast %cst_52 : f32 to vector<1x16x16xf32>
    %107 = arith.addf %103, %106 : vector<1x16x16xf32>
    %108 = arith.select %105, %107, %103 : vector<1x16x16xi1>, vector<1x16x16xf32>
    %c0_53 = arith.constant 0 : index
    %c0_54 = arith.constant 0 : index
    %c0_55 = arith.constant 0 : index
    %109 = vector.load %arg7[%c0_53, %c0_54, %c0_55] : memref<1x16x16xf32, #tpu.memory_space<vmem>>, vector<1x16x16xf32>
    tpu.vector_store %arg7[%c0_53, %c0_54, %c0_55], %108 {strides = array<i32>} : memref<1x16x16xf32, #tpu.memory_space<vmem>>, vector<1x16x16xf32>,
    return
  }
  func.func @transform_0(%arg0: i32) -> (i32, i32, i32) {
    %c0_i32 = arith.constant 0 : i32
    %c0_i32_0 = arith.constant 0 : i32
    %c0_i32_1 = arith.constant 0 : i32
    return %arg0, %c0_i32, %c0_i32_0 : i32, i32, i32
  }
  func.func @transform_1(%arg0: i32) -> (i32, i32) {
    %c0_i32 = arith.constant 0 : i32
    %c0_i32_0 = arith.constant 0 : i32
    %c0_i32_1 = arith.constant 0 : i32
    return %c0_i32, %c0_i32_0 : i32, i32
  }
  func.func @transform_2(%arg0: i32) -> (i32, i32) {
    %c0_i32 = arith.constant 0 : i32
    %c0_i32_0 = arith.constant 0 : i32
    %c0_i32_1 = arith.constant 0 : i32
    return %c0_i32, %c0_i32_0 : i32, i32
  }
  func.func @transform_3(%arg0: i32) -> (i32, i32) {
    %c0_i32 = arith.constant 0 : i32
    %c0_i32_0 = arith.constant 0 : i32
    %c0_i32_1 = arith.constant 0 : i32
    return %c0_i32, %c0_i32_0 : i32, i32
  }
  func.func @transform_4(%arg0: i32) -> (i32, i32) {
    %c0_i32 = arith.constant 0 : i32
    %c0_i32_0 = arith.constant 0 : i32
    %c0_i32_1 = arith.constant 0 : i32
    return %c0_i32, %c0_i32_0 : i32, i32
  }
  func.func @transform_5(%arg0: i32) -> (i32, i32) {
    %c0_i32 = arith.constant 0 : i32
    %c0_i32_0 = arith.constant 0 : i32
    %c0_i32_1 = arith.constant 0 : i32
    return %c0_i32, %c0_i32_0 : i32, i32
  }
  func.func @transform_6(%arg0: i32) -> (i32, i32, i32) {
    %c0_i32 = arith.constant 0 : i32
    %c0_i32_0 = arith.constant 0 : i32
    %c0_i32_1 = arith.constant 0 : i32
    return %arg0, %c0_i32, %c0_i32_0 : i32, i32, i32
  }
}

</mosaic_0001>

<bundles_post_ra>
// kernel: tpu_custom_call.1
= control target key start
LH: loop header
LB: loop body
LE: loop exit
PB: predicated region body
PF: predicated region fallthrough
CT: control target
= control target key end

     0   :  { %11 = vsyncpa [#allocation3], 0  ;;  %s5070_s0 = inlined_call_operand.hbm [shape: f32[2,16,16], index: 0, kind: input, shape index: {}]   ;;  %s5071_s1 = inlined_call_operand.hbm [shape: f32[16,16], index: 1, kind: input, shape index: {}]   ;;  %s5072_s2 = inlined_call_operand.hbm [shape: f32[16,16], index: 2, kind: input, shape index: {}]   ;;  %s5073_s3 = inlined_call_operand.hbm [shape: f32[16,16], index: 3, kind: input, shape index: {}]   ;;  %s5074_s4 = inlined_call_operand.hbm [shape: f32[16,16], index: 4, kind: input, shape index: {}]   ;;  %s5075_s5 = inlined_call_operand.vmem [shape: f32[16,16], index: 5, kind: input, shape index: {}]   ;;  %s5076_s6 = inlined_call_operand.hbm [shape: f32[2,16,16], index: 6, kind: output, shape index: {}]  }
   0x1   :  { %13 = vsyncpa [#allocation3 + $0x1], 0 }
   0x2   :  { %14 = vsyncpa [#allocation6], 0 }
   0x3   :  { %15 = vsyncpa [#allocation9], 0 }
   0x4   :  { %16 = vsyncpa [#allocation4], 0 }
   0x5   :  { %18 = vsyncpa [#allocation4 + $0x1], 0  ;;  %s4616_s21 = smov 0   ;;  %s4618_s22 = smov 0  }
   0x6   :  { %s4620_s23 = smov 0   ;;  %s4622_s24 = smov 0  }
   0x7 LB: > { %s4637_s25 = sadd.s32 4294967295, %s4566_s24   ;;  %s3618_s26 = sadd.s32 4294967294, %s4566_s24   ;;  %s4566_s24 = sphi %s4622_s24, %s5103_s24   ;;  %s4562_s23 = sphi %s4620_s23, %s5102_s23   ;;  %s4558_s22 = sphi %s4618_s22, %s5101_s22   ;;  %s4554_s21 = sphi %s4616_s21, %s5100_s21  }
   0x8   : > { %p44_p0 = scmp.ne.s32.totalorder %s4558_s22, %s4554_s21  ;;  %p5077_p1 = scmp.eq.s32.totalorder %s4637_s25, 0 }
   0x9   : > { %p179_p3 = scmp.eq.s32.totalorder %s3618_s26, 1  ;;  %p3619_p5 = scmp.ge.s32.totalorder %s4566_s24, 1 }
   0xa   : > { %p4646_p4 = por %p5077_p1, %p44_p0  ;;  %p186_p7 = scmp.lt.s32.totalorder %s4566_s24, 3 }
   0xb   : > { %p4651_p6 = por %p179_p3, %p44_p0  ;;  %s4568_s30 = smov [#allocation5]  }
   0xc   : > { %s5080_s27 = scalar_select %p4646_p4, 1, 0 }
   0xd   : > { %s5081_s28 = scalar_select %p4651_p6, 1, 0 }
   0xe   : > { %p4656_p8 = pnand %p3619_p5, %p186_p7  ;;  %s198_s7 = sshll.u32 %s4568_s30, 4  ;;  %s4660_s7 = int_to_ptr.vmem [resolvable:$true] %s198_s7 }
   0xf   : > { %s4569_s9 = smov [#allocation8]   ;;  %s4570_s11 = smov [#allocation7]  }
  0x10   : > { %s5082_s29 = scalar_select %p4656_p8, 1, 0 }
  0x11   : > { %p4268_p9 = pneg %p4656_p8  ;;  %s224_s10 = sshll.u32 %s4569_s9, 4  ;;  %s4671_s10 = int_to_ptr.vmem [resolvable:$true] %s224_s10 }
  0x12   : > { %s4673_s12 = sshll.u32 %s4570_s11, 4  ;;  %s4350_s15 = scalar_lea.hbm %s5071_s1, 256  ;;  %s212_s12 = int_to_ptr.vmem [resolvable:$true] %s4673_s12 }
  0x13   : > { %p4667_p11 = pnand %p4268_p9, %p5077_p1  ;;  %p4351_p12 = scmp.ne.s32.totalorder %s5071_s1, %s4350_s15 }
  0x14   : > { %p4357_p5 = scmp.lt.u32.totalorder %s4350_s15, %s5071_s1 }
  0x15   : > { %p4683_p13 = pneg %p4667_p11 }
  0x17   : > { %p4353_p0 = pnand %p4683_p13, %p4351_p12 }
  0x19   : > { %p4354_p3 = pneg %p4353_p0 }
  0x1b   : > { %p4359_p7 = pnand %p4357_p5, %p4354_p3 }
  0x1d   : > { %4362 = shalt.err (!%p4359_p7)
}
  0x1e   : > { %s4363_s26 = scalar_lea.vmem %s4660_s7, 256  ;;  %p4371_p2 = scmp.lt.s32.totalorder %s4660_s7, %s4660_s7 }
  0x1f   : > { %p4364_p9 = scmp.ne.s32.totalorder %s4660_s7, %s4363_s26  ;;  %p4372_p6 = scmp.lt.s32.totalorder %s4363_s26, %s4363_s26 }
  0x21   : > { %p4366_p10 = pnand %p4364_p9, %p4683_p13  ;;  %p4373_p12 = por %p4372_p6, %p4371_p2 }
  0x23   : > { %p4367_p1 = pneg %p4366_p10 }
  0x25   : > { %p4374_p0 = pnand %p4373_p12, %p4367_p1 }
  0x27   : > { %4377 = shalt.err (!%p4374_p0)
}
  0x28   : > { %s4571_s30 = smov 128   ;;  %s4572_s9 = smov 8  }
  0x29   : > { %4271 = dma.hbm_to_vmem [thread:$0]  (!%p4667_p11), %s5071_s1, 256, %s4660_s7, [#allocation6], %s4571_s30, %s4571_s30, %s4572_s9  }
  0x2a   : > { %s4378_s16 = scalar_lea.hbm %s5073_s3, 256 }
  0x2b   : > { %p4379_p1 = scmp.ne.s32.totalorder %s5073_s3, %s4378_s16  ;;  %p4385_p10 = scmp.lt.u32.totalorder %s4378_s16, %s5073_s3 }
  0x2d   : > { %p4381_p2 = pnand %p4379_p1, %p4683_p13 }
  0x2f   : > { %p4382_p6 = pneg %p4381_p2 }
  0x31   : > { %p4387_p3 = pnand %p4385_p10, %p4382_p6 }
  0x33   : > { %4390 = shalt.err (!%p4387_p3)
}
  0x34   : > { %s4391_s7 = scalar_lea.vmem %s4671_s10, 256  ;;  %p4399_p12 = scmp.lt.s32.totalorder %s4671_s10, %s4671_s10 }
  0x35   : > { %p4392_p5 = scmp.ne.s32.totalorder %s4671_s10, %s4391_s7  ;;  %p4400_p0 = scmp.lt.s32.totalorder %s4391_s7, %s4391_s7 }
  0x37   : > { %p4394_p7 = pnand %p4392_p5, %p4683_p13  ;;  %p4401_p1 = por %p4400_p0, %p4399_p12 }
  0x39   : > { %p4395_p9 = pneg %p4394_p7 }
  0x3b   : > { %p4402_p2 = pnand %p4401_p1, %p4395_p9 }
  0x3d   : > { %4405 = shalt.err (!%p4402_p2)
}
  0x3e   : > { %4277 = dma.hbm_to_vmem [thread:$0]  (!%p4667_p11), %s5073_s3, 256, %s4671_s10, [#allocation9], %s4571_s30, %s4571_s30, %s4572_s9  }
  0x3f   : > { %s4406_s16 = scalar_lea.hbm %s5072_s2, 256 }
  0x40   : > { %p4407_p6 = scmp.ne.s32.totalorder %s5072_s2, %s4406_s16  ;;  %p4413_p5 = scmp.lt.u32.totalorder %s4406_s16, %s5072_s2 }
  0x42   : > { %p4409_p10 = pnand %p4407_p6, %p4683_p13 }
  0x44   : > { %p4410_p3 = pneg %p4409_p10 }
  0x46   : > { %p4415_p7 = pnand %p4413_p5, %p4410_p3 }
  0x48   : > { %4418 = shalt.err (!%p4415_p7)
}
  0x49   : > { %s4419_s7 = scalar_lea.vmem %s212_s12, 256  ;;  %p4427_p1 = scmp.lt.s32.totalorder %s212_s12, %s212_s12 }
  0x4a   : > { %p4420_p9 = scmp.ne.s32.totalorder %s212_s12, %s4419_s7  ;;  %p4428_p2 = scmp.lt.s32.totalorder %s4419_s7, %s4419_s7 }
  0x4c   : > { %p4422_p12 = pnand %p4420_p9, %p4683_p13  ;;  %p4429_p4 = por %p4428_p2, %p4427_p1 }
  0x4e   : > { %p4423_p0 = pneg %p4422_p12 }
  0x50   : > { %p4430_p8 = pnand %p4429_p4, %p4423_p0 }
  0x52   : > { %4433 = shalt.err (!%p4430_p8)
}
  0x53   : > { %4274 = dma.hbm_to_vmem [thread:$0]  (!%p4667_p11), %s5072_s2, 256, %s212_s12, [#allocation6], %s4571_s30, %s4571_s30, %s4572_s9  }
  0x54   : > { %s4573_s13 = smov [#allocation10]   ;;  %s4434_s17 = scalar_lea.hbm %s5074_s4, 256 }
  0x55   : > { %s237_s14 = sshll.u32 %s4573_s13, 4  ;;  %p4435_p4 = scmp.ne.s32.totalorder %s5074_s4, %s4434_s17  ;;  %s238_s14 = int_to_ptr.vmem [resolvable:$true] %s237_s14 }
  0x56   : > { %p4441_p10 = scmp.lt.u32.totalorder %s4434_s17, %s5074_s4 }
  0x57   : > { %p4437_p8 = pnand %p4435_p4, %p4683_p13 }
  0x59   : > { %p4438_p6 = pneg %p4437_p8 }
  0x5b   : > { %p4443_p3 = pnand %p4441_p10, %p4438_p6 }
  0x5d   : > { %4446 = shalt.err (!%p4443_p3)
}
  0x5e   : > { %s4447_s12 = scalar_lea.vmem %s238_s14, 256  ;;  %p4455_p12 = scmp.lt.s32.totalorder %s238_s14, %s238_s14 }
  0x5f   : > { %p4448_p5 = scmp.ne.s32.totalorder %s238_s14, %s4447_s12  ;;  %p4456_p0 = scmp.lt.s32.totalorder %s4447_s12, %s4447_s12 }
  0x61   : > { %p4450_p7 = pnand %p4448_p5, %p4683_p13  ;;  %p4457_p1 = por %p4456_p0, %p4455_p12 }
  0x63   : > { %p4451_p9 = pneg %p4450_p7 }
  0x65   : > { %p4458_p2 = pnand %p4457_p1, %p4451_p9 }
  0x67   : > { %4461 = shalt.err (!%p4458_p2)
}
  0x68   : > { %4280 = dma.hbm_to_vmem [thread:$0]  (!%p4667_p11), %s5074_s4, 256, %s238_s14, [#allocation9], %s4571_s30, %s4571_s30, %s4572_s9  }
  0x69   : > { %s4777_s18 = sadd.s32 1, %s4566_s24   ;;  %s31_s8 = sadd.s32 1, %s4562_s23 }
  0x6a   : > { %s28_s13 = ssub.s32 %s4566_s24, %s4777_s18  ;;  %p38_p13 = scmp.ne.s32.totalorder %s4562_s23, %s4558_s22 }
  0x6b   : > { %p29_p4 = scmp.eq.s32.totalorder %s28_s13, 0  ;;  %p39_p8 = scmp.eq.s32.totalorder %s4566_s24, 0 }
  0x6c   : > { %p5085_p6 = scmp.eq.s32.totalorder %s4637_s25, 1  ;;  %p4293_p3 = scmp.lt.s32.totalorder %s4566_s24, 2 }
  0x6d   : > { %s4793_s16 = scalar_select %p29_p4, %s4562_s23, %s31_s8  }
  0x6e   : > { %p4787_p10 = por %p5085_p6, %p38_p13  ;;  %p40_p5 = por %p39_p8, %p38_p13 }
  0x6f   : > { %s254_s17 = sand.u32 1, %s4562_s23   ;;  %s3646_s14 = sshll.u32 %s4566_s24, 8 }
  0x70   : > { %s3625_s19 = sshll.u32 %s254_s17, 4  ;;  %s4800_s7 = scalar_lea.hbm %s5070_s0, %s3646_s14 }
  0x71   : > { %s258_s12 = scalar_lea.vmem [#allocation2], %s3625_s19  ;;  %p4804_p11 = pnand %p4293_p3, %p40_p5 }
  0x72   : > { %s265_s10 = sshll.u32 %s258_s12, 4  ;;  %s4808_s8 = scalar_lea.sflag [#allocation3], %s254_s17  ;;  %s4802_s10 = int_to_ptr.vmem [resolvable:$true] %s265_s10 }
  0x73   : > { %s4462_s13 = scalar_lea.hbm %s4800_s7, 256  ;;  %p4464_p9 = pneg %p4804_p11 }
  0x74   : > { %p4463_p7 = scmp.ne.s32.totalorder %s4800_s7, %s4462_s13  ;;  %s4467_s20 = scalar_lea.hbm %s5070_s0, 512 }
  0x75   : > { %p4468_p1 = scmp.lt.u32.totalorder %s4800_s7, %s5070_s0  ;;  %p4469_p2 = scmp.lt.u32.totalorder %s4467_s20, %s4462_s13 }
  0x76   : > { %p4465_p12 = pnand %p4464_p9, %p4463_p7  ;;  %p4471_p4 = scmp.lt.u32.totalorder %s4462_s13, %s4800_s7 }
  0x77   : > { %p4470_p13 = por %p4469_p2, %p4468_p1 }
  0x78   : > { %p4466_p0 = pneg %p4465_p12 }
  0x79   : > { %p4472_p8 = por %p4471_p4, %p4470_p13 }
  0x7b   : > { %p4473_p6 = pnand %p4472_p8, %p4466_p0 }
  0x7d   : > { %4476 = shalt.err (!%p4473_p6)
}
  0x7e   : > { %s4477_s17 = scalar_lea.vmem %s4802_s10, 256  ;;  %s4574_s19 = smov [#allocation2]  }
  0x7f   : > { %p4478_p3 = scmp.ne.s32.totalorder %s4802_s10, %s4477_s17  ;;  %s4482_s14 = sshll.u32 %s4574_s19, 4  ;;  %s4483_s14 = int_to_ptr.vmem [resolvable:$false] %s4482_s14 }
  0x80   : > { %s4484_s26 = scalar_lea.vmem %s4483_s14, 512  ;;  %p4485_p12 = scmp.lt.s32.totalorder %s4802_s10, %s4483_s14 }
  0x81   : > { %p4480_p5 = pnand %p4478_p3, %p4464_p9  ;;  %p4486_p1 = scmp.lt.s32.totalorder %s4484_s26, %s4477_s17 }
  0x83   : > { %p4481_p7 = pneg %p4480_p5  ;;  %p4487_p2 = por %p4486_p1, %p4485_p12 }
  0x85   : > { %p4488_p13 = pnand %p4487_p2, %p4481_p7 }
  0x87   : > { %4491 = shalt.err (!%p4488_p13)
}
  0x88   : > { %4284 = dma.hbm_to_vmem [thread:$0]  (!%p4804_p11), %s4800_s7, 256, %s4802_s10, %s4808_s8, %s4571_s30, %s4571_s30, %s4572_s9  }
  0x89   : > { %p5088_p9 = scmp.ne.s32.totalorder %s5082_s29, 0 }
  0x8a   : > { %s4842_s13 = sand.u32 (!%p5088_p9), 1, %s4558_s22   ;;  %p5089_p0 = scmp.ne.s32.totalorder (!%p5088_p9), %s5080_s27, 0 }
  0x8b   : > { %277 = sbr.rel (%p5088_p9) target bundleno = 1286 (0x506), region = 44  ;;  %s3629_s20 = sshll.u32 (!%p5088_p9), %s4842_s13, 4 }
  0x8c   : > { %s280_s12 = scalar_lea.sflag (!%p5088_p9), [#allocation3], %s4842_s13  ;;  %s283_s11 = scalar_lea.vmem (!%p5088_p9), [#allocation2], %s3629_s20 }
  0x92   : > { %4537 = dma.done.wait (%p5089_p0), %s280_s12, 256  }
  0x93   : > { %4539 = vsyncadd (%p5089_p0), %s280_s12, 4294967040  ;;  %p5090_p11 = scmp.eq.s32.totalorder %s4637_s25, 0 }
  0x95   : > { %4541 = dma.done.wait (%p5090_p11), [#allocation6], 512   ;;  %p5091_p4 = pmov %p5090_p11 }
  0x97   : > { %4543 = vsyncadd (%p5091_p4), [#allocation6], 4294966784  ;;  %p5092_p8 = pmov %p5091_p4 }
  0x98   : > { %p5093_p6 = pmov %p5091_p4 }
  0x99   : > { %4545 = dma.done.wait (%p5092_p8), [#allocation9], 512  }
  0x9a   : > { %4547 = vsyncadd (%p5093_p6), [#allocation9], 4294966784  ;;  %vm336_vm0 = vcmask 130048   ;;  %v334_v0 = vld [vmem:[#allocation5] sm:$0xff]  ;;  %v335_v1 = vld [vmem:[#allocation5 + $0x8] sm:$0xff]  ;;  %vm4577_vm11 = vmmov 1  }
  0x9b   : > { %v332_v2 = vld [vmem:[%s283_s11] sm:$0xff]  ;;  %v344_v3 = vand.u32 4294901760, %v334_v0  ;;  %v347_v4 = vand.u32 4294901760, %v335_v1  ;;  %v333_v6 = vld [vmem:[%s283_s11 + $0x8] sm:$0xff]  ;;  %s3647_s7 = sshll.u32 %s4637_s25, 8  ;;  %s327_s10 = scalar_lea.vmem [#allocation11], %s3629_s20 }
  0x9c   : > { %v338_v5 = vsel %vm336_vm0, %v332_v2, 0  ;;  %v341_v8 = vsel %vm336_vm0, %v333_v6, 0  ;;  %v328_v30 = vld [vmem:[#allocation10] sm:$0xff]  ;;  %v329_v37 = vld [vmem:[#allocation10 + $0x8] sm:$0xff]  ;;  %v330_v60 = vld [vmem:[%s5075_s5] sm:$0xff]  ;;  %s3507_s8 = sshll.u32 %s327_s10, 4  ;;  %s5022_s14 = scalar_lea.hbm %s5076_s6, %s3647_s7  ;;  %s5024_s8 = int_to_ptr.vmem [resolvable:$true] %s3507_s8 }
  0x9d   : > { %v410_v7 = vand.u32 4294901760, %v338_v5  ;;  %v4044_v9 = vpack.c.bf16 %v347_v4, %v344_v3  ;;  %v420_v10 = vand.u32 4294901760, %v341_v8  ;;  %v432_v11 = vsub.f32 %v334_v0, %v344_v3  ;;  %v1353_v2 = vld [vmem:[#allocation8] sm:$0xff]  ;;  %v1354_v3 = vld [vmem:[#allocation8 + $0x8] sm:$0xff]  ;;  %s3494_s25 = scalar_lea.sflag [#allocation4], %s4842_s13  ;;  %s4492_s26 = scalar_lea.vmem %s5024_s8, 256 }
  0x9e   : > { %v439_v12 = vsub.f32 %v335_v1, %v347_v4  ;;  %v846_v31 = vsel %vm336_vm0, %v328_v30, 0  ;;  %v849_v38 = vsel %vm336_vm0, %v329_v37, 0  ;;  %v1864_v61 = vsel %vm336_vm0, %v330_v60, 0  ;;  %p4493_p3 = scmp.ne.s32.totalorder %s5024_s8, %s4492_s26  ;;  %s4578_s20 = smov [#allocation11]  }
  0x9f   : > { %v411_v13 = vsub.f32 %v338_v5, %v410_v7  ;;  %4045 = vmatprep.subr.bf16.mxu0 %v4044_v9  ;;  %v421_v14 = vsub.f32 %v341_v8, %v420_v10  ;;  %v433_v15 = vand.u32 4294901760, %v432_v11  ;;  %v918_v32 = vand.u32 4294901760, %v846_v31  ;;  %s4496_s12 = sshll.u32 %s4578_s20, 4  ;;  %s4497_s12 = int_to_ptr.vmem [resolvable:$false] %s4496_s12 }
  0xa0   : > { %v440_v16 = vand.u32 4294901760, %v439_v12  ;;  %4047 = vmatpush3.bf16.msra.mxu0 %v4044_v9  ;;  %v4052_v28 = vpack.c.bf16 %v439_v12, %v432_v11  ;;  %v928_v39 = vand.u32 4294901760, %v849_v38  ;;  %v4868_v62 = vand.u32 4294901760, %v1864_v61  ;;  %p4494_p5 = pnand %p4493_p3, %p4787_p10  ;;  %s4498_s11 = scalar_lea.vmem %s4497_s12, 512 }
  0xa1   : > { %v412_v17 = vand.u32 4294901760, %v411_v13  ;;  %v422_v18 = vand.u32 4294901760, %v421_v14  ;;  %v434_v19 = vsub.f32 %v432_v11, %v433_v15  ;;  %v919_v33 = vsub.f32 %v846_v31, %v918_v32  ;;  %p4499_p12 = scmp.lt.s32.totalorder %s5024_s8, %s4497_s12  ;;  %p4500_p1 = scmp.lt.s32.totalorder %s4498_s11, %s4492_s26 }
  0xa2   : > { %v441_v20 = vsub.f32 %v439_v12, %v440_v16  ;;  %v4060_v29 = vpack.c.bf16 %v440_v16, %v433_v15  ;;  %v929_v40 = vsub.f32 %v849_v38, %v928_v39  ;;  %v4871_v63 = vsub.f32 %v1864_v61, %v4868_v62  ;;  %p4495_p7 = pneg %p4494_p5 }
  0xa3   : > { %v413_v21 = vsub.f32 %v411_v13, %v412_v17  ;;  %v423_v22 = vsub.f32 %v421_v14, %v422_v18  ;;  %v435_v23 = vand.u32 4294901760, %v434_v19  ;;  %v920_v34 = vand.u32 4294901760, %v919_v33  ;;  %v331_v19 = vld [vmem:[%s5075_s5 + $0x8] sm:$0xff]  ;;  %p4501_p2 = por %p4500_p1, %p4499_p12 }
  0xa4   : > { %v442_v24 = vand.u32 4294901760, %v441_v20  ;;  %v930_v41 = vand.u32 4294901760, %v929_v40  ;;  %v4874_v0 = vand.u32 4294901760, %v4871_v63  ;;  %v1362_v4 = vand.u32 4294901760, %v1353_v2 }
  0xa5   : > { %v414_v25 = vand.u32 4294901760, %v413_v21  ;;  %v424_v26 = vand.u32 4294901760, %v423_v22  ;;  %v921_v35 = vsub.f32 %v919_v33, %v920_v34  ;;  %v1365_v5 = vand.u32 4294901760, %v1354_v3  ;;  %p4502_p13 = pnand %p4501_p2, %p4495_p7 }
  0xa6   : > { %v4048_v27 = vpack.c.bf16 %v442_v24, %v435_v23  ;;  %v931_v46 = vsub.f32 %v929_v40, %v930_v41  ;;  %v1939_v1 = vsub.f32 %v4871_v63, %v4874_v0  ;;  %v1450_v8 = vsub.f32 %v1353_v2, %v1362_v4 }
  0xa7   : > { %3796 = vmatprep.mubr.f32.mxu0 %v414_v25  ;;  %v922_v36 = vand.u32 4294901760, %v921_v35  ;;  %v1867_v20 = vsel %vm336_vm0, %v331_v19, 0 }
  0xa8   : > { %3797 = vmatmul.mubr.f32.vlgmr.msra.gmra.mrb[0].mxu0 %v424_v26  ;;  %4049 = vmatprep.subr.bf16.mxu0 %v4048_v27  ;;  %v932_v52 = vand.u32 4294901760, %v931_v46  ;;  %v4878_v6 = vand.u32 4294901760, %v1939_v1  ;;  %v4891_v21 = vand.u32 4294901760, %v1867_v20 }
  0xa9   : > { %4051 = vmatpush3.bf16.msra.mxu0 %v4048_v27  ;;  %3803 = vmatprep.mubr.f32.mxu0 %v410_v7 }
  0xaa   : > { %4053 = vmatprep.subr.bf16.mxu0 %v4052_v28  ;;  %3838 = vmatprep.mubr.f32.mxu1 %v922_v36  ;;  %v4894_v22 = vsub.f32 %v1867_v20, %v4891_v21 }
  0xac   : > { %v4897_v23 = vand.u32 4294901760, %v4894_v22 }
  0xae   : > { %v1949_v31 = vsub.f32 %v4894_v22, %v4897_v23 }
  0xb0   : > { %3804 = vmatmul.mubr.f32.vlgmr.msra.gmra.mrb[0].mxu0 %v420_v10 }
  0xb1   : > { %4055 = vmatpush3.bf16.msra.mxu0 %v4052_v28  ;;  %3810 = vmatprep.mubr.f32.mxu0 %v411_v13 }
  0xb2   : > { %4057 = vmatprep.subr.bf16.mxu0 %v4044_v9 }
  0xb8   : > { %3811 = vmatmul.mubr.f32.vlgmr.msra.gmra.mrb[0].mxu0 %v421_v14 }
  0xb9   : > { %4059 = vmatpush3.bf16.msra.mxu0 %v4044_v9  ;;  %3817 = vmatprep.mubr.f32.mxu0 %v412_v17 }
  0xba   : > { %4061 = vmatprep.subr.bf16.mxu0 %v4060_v29 }
  0xc0   : > { %3818 = vmatmul.mubr.f32.vlgmr.msra.gmra.mrb[0].mxu0 %v422_v18 }
  0xc1   : > { %4063 = vmatpush3.bf16.msra.mxu0 %v4060_v29  ;;  %3824 = vmatprep.mubr.f32.mxu0 %v410_v7 }
  0xc2   : > { %4065 = vmatprep.subr.bf16.mxu0 %v4044_v9 }
  0xc8   : > { %3825 = vmatmul.mubr.f32.vlgmr.msra.gmra.mrb[0].mxu0 %v420_v10 }
  0xc9   : > { %4067 = vmatpush3.bf16.msra.mxu0 %v4044_v9  ;;  %3831 = vmatprep.mubr.f32.mxu0 %v410_v7  ;;  %v4880_v7 = vpack.c.bf16 %v1365_v5, %v1362_v4  ;;  %v1457_v9 = vsub.f32 %v1354_v3, %v1365_v5 }
  0xcb   : > { %4093 = vmatprep.subr.bf16.mxu0 %v4880_v7  ;;  %v1458_v11 = vand.u32 4294901760, %v1457_v9  ;;  %v4100_v17 = vpack.c.bf16 %v1457_v9, %v1450_v8 }
  0xcd   : > { %v1459_v13 = vsub.f32 %v1457_v9, %v1458_v11 }
  0xcf   : > { %v1460_v15 = vand.u32 4294901760, %v1459_v13 }
  0xd0   : > { %3832 = vmatmul.mubr.f32.vlgmr.msra.gmra.mrb[0].mxu0 %v420_v10  ;;  %v1451_v10 = vand.u32 4294901760, %v1450_v8 }
  0xd1   : > { %4095 = vmatpush3.bf16.msra.mxu0 %v4880_v7 }
  0xd2   : > { %v1452_v12 = vsub.f32 %v1450_v8, %v1451_v10  ;;  %v4885_v18 = vpack.c.bf16 %v1458_v11, %v1451_v10 }
  0xd4   : > { %v1453_v14 = vand.u32 4294901760, %v1452_v12 }
  0xd6   : > { %v4096_v16 = vpack.c.bf16 %v1460_v15, %v1453_v14 }
  0xd8   : > { %4097 = vmatprep.subr.bf16.mxu0 %v4096_v16 }
 0x1a3   : > { %v3833_v42 = vpop.f32.mrb[0].mxu0 }
 0x1a4   : > { %v855_v43 = vand.u32 4294901760, %v3833_v42  ;;  %v835_v44 = vpop.f32.mrb[1].mxu0 }
 0x1a5   : > { %v852_v45 = vand.u32 4294901760, %v835_v44 }
 0x1a6   : > { %v947_v47 = vsub.f32 %v3833_v42, %v855_v43 }
 0x1a7   : > { %v4068_v48 = vpack.c.bf16 %v855_v43, %v852_v45  ;;  %v940_v49 = vsub.f32 %v835_v44, %v852_v45 }
 0x1a8   : > { %v948_v50 = vand.u32 4294901760, %v947_v47 }
 0x1a9   : > { %v941_v51 = vand.u32 4294901760, %v940_v49  ;;  %4069 = vmatprep.subr.bf16.mxu1 %v4068_v48  ;;  %v4076_v53 = vpack.c.bf16 %v947_v47, %v940_v49 }
 0x1aa   : > { %v949_v54 = vsub.f32 %v947_v47, %v948_v50  ;;  %4071 = vmatpush3.bf16.msra.mxu1 %v4068_v48 }
 0x1ab   : > { %v942_v55 = vsub.f32 %v940_v49, %v941_v51  ;;  %v4084_v56 = vpack.c.bf16 %v948_v50, %v941_v51 }
 0x1ac   : > { %v950_v57 = vand.u32 4294901760, %v949_v54  ;;  %v2371_v54 = vld [vmem:[#allocation7] sm:$0xff] }
 0x1ad   : > { %3839 = vmatmul.mubr.f32.vlgmr.msra.gmra.mrb[0].mxu1 %v932_v52  ;;  %v943_v58 = vand.u32 4294901760, %v942_v55  ;;  %v2372_v55 = vld [vmem:[#allocation7 + $0x8] sm:$0xff] }
 0x1ae   : > { %3845 = vmatprep.mubr.f32.mxu1 %v918_v32 }
 0x1af   : > { %v4072_v59 = vpack.c.bf16 %v950_v57, %v943_v58  ;;  %v2383_v57 = vand.u32 4294901760, %v2372_v55 }
 0x1b1   : > { %4073 = vmatprep.subr.bf16.mxu1 %v4072_v59  ;;  %v2475_v60 = vsub.f32 %v2372_v55, %v2383_v57 }
 0x1b2   : > { %4075 = vmatpush3.bf16.msra.mxu1 %v4072_v59 }
 0x1b3   : > { %4077 = vmatprep.subr.bf16.mxu1 %v4076_v53  ;;  %v2476_v1 = vand.u32 4294901760, %v2475_v60 }
 0x1b5   : > { %3846 = vmatmul.mubr.f32.vlgmr.msra.gmra.mrb[0].mxu1 %v928_v39  ;;  %v2477_v3 = vsub.f32 %v2475_v60, %v2476_v1 }
 0x1b6   : > { %4079 = vmatpush3.bf16.msra.mxu1 %v4076_v53  ;;  %3852 = vmatprep.mubr.f32.mxu1 %v919_v33 }
 0x1b7   : > { %4081 = vmatprep.subr.bf16.mxu1 %v4068_v48  ;;  %v2478_v5 = vand.u32 4294901760, %v2477_v3 }
 0x1bd   : > { %3853 = vmatmul.mubr.f32.vlgmr.msra.gmra.mrb[0].mxu1 %v929_v40 }
 0x1be   : > { %4083 = vmatpush3.bf16.msra.mxu1 %v4068_v48  ;;  %3859 = vmatprep.mubr.f32.mxu1 %v920_v34 }
 0x1bf   : > { %4085 = vmatprep.subr.bf16.mxu1 %v4084_v56 }
 0x1c5   : > { %3860 = vmatmul.mubr.f32.vlgmr.msra.gmra.mrb[0].mxu1 %v930_v41  ;;  %v4906_v41 = vand.u32 4294901760, %v1949_v31 }
 0x1c6   : > { %4087 = vmatpush3.bf16.msra.mxu1 %v4084_v56  ;;  %3866 = vmatprep.mubr.f32.mxu1 %v918_v32  ;;  %v2380_v56 = vand.u32 4294901760, %v2371_v54 }
 0x1c7   : > { %4089 = vmatprep.subr.bf16.mxu1 %v4068_v48 }
 0x1c8   : > { %v4929_v58 = vpack.c.bf16 %v2383_v57, %v2380_v56  ;;  %v2468_v59 = vsub.f32 %v2371_v54, %v2380_v56  ;;  %v4576_v57 = vmov 0.0  }
 0x1ca   : > { %v2469_v61 = vand.u32 4294901760, %v2468_v59 }
 0x1cc   : > { %v2470_v2 = vsub.f32 %v2468_v59, %v2469_v61  ;;  %v4933_v8 = vpack.c.bf16 %v2476_v1, %v2469_v61 }
 0x1cd   : > { %3867 = vmatmul.mubr.f32.vlgmr.msra.gmra.mrb[0].mxu1 %v928_v39 }
 0x1ce   : > { %4091 = vmatpush3.bf16.msra.mxu1 %v4068_v48  ;;  %3873 = vmatprep.mubr.f32.mxu1 %v918_v32  ;;  %v2471_v4 = vand.u32 4294901760, %v2470_v2 }
 0x1d5   : > { %3874 = vmatmul.mubr.f32.vlgmr.msra.gmra.mrb[0].mxu1 %v928_v39 }
 0x1d6   : > { %3922 = vmatprep.mubr.f32.mxu1 %v4878_v6 }
 0x2a8   : > { %v3875_v24 = vpop.f32.mrb[0].mxu1 }
 0x2a9   : > { %v1359_v25 = vsel %vm336_vm0, %v3875_v24, 0  ;;  %v1873_v26 = vand.u32 4294901760, %v3875_v24  ;;  %v1343_v27 = vpop.f32.mrb[1].mxu1 }
 0x2aa   : > { %v4900_v28 = vand.u32 4294901760, %v1359_v25  ;;  %v1356_v29 = vsel %vm336_vm0, %v1343_v27, 0  ;;  %v1870_v30 = vand.u32 4294901760, %v1343_v27 }
 0x2ab   : > { %v1965_v32 = vsub.f32 %v3875_v24, %v1873_v26  ;;  %v1428_v33 = vand.u32 4294901760, %v1356_v29 }
 0x2ac   : > { %v1439_v34 = vsub.f32 %v1359_v25, %v4900_v28  ;;  %v4116_v35 = vpack.c.bf16 %v1873_v26, %v1870_v30  ;;  %v1958_v36 = vsub.f32 %v1343_v27, %v1870_v30 }
 0x2ad   : > { %v1966_v37 = vand.u32 4294901760, %v1965_v32  ;;  %v1429_v38 = vsub.f32 %v1356_v29, %v1428_v33 }
 0x2ae   : > { %v1440_v39 = vand.u32 4294901760, %v1439_v34  ;;  %v1959_v40 = vand.u32 4294901760, %v1958_v36  ;;  %4117 = vmatprep.subr.bf16.mxu1 %v4116_v35  ;;  %v4124_v42 = vpack.c.bf16 %v1965_v32, %v1958_v36 }
 0x2af   : > { %4119 = vmatpush3.bf16.msra.mxu1 %v4116_v35  ;;  %v1430_v43 = vand.u32 4294901760, %v1429_v38  ;;  %v1967_v44 = vsub.f32 %v1965_v32, %v1966_v37 }
 0x2b0   : > { %v1441_v45 = vsub.f32 %v1439_v34, %v1440_v39  ;;  %v1960_v46 = vsub.f32 %v1958_v36, %v1959_v40  ;;  %v4132_v47 = vpack.c.bf16 %v1966_v37, %v1959_v40 }
 0x2b1   : > { %v1431_v48 = vsub.f32 %v1429_v38, %v1430_v43  ;;  %v1968_v49 = vand.u32 4294901760, %v1967_v44 }
 0x2b2   : > { %3923 = vmatmul.mubr.f32.vlgmr.msra.gmra.mrb[2].mxu1 %v4906_v41  ;;  %v1961_v50 = vand.u32 4294901760, %v1960_v46  ;;  %v1442_v52 = vand.u32 4294901760, %v1441_v45 }
 0x2b3   : > { %v1432_v51 = vand.u32 4294901760, %v1431_v48  ;;  %3929 = vmatprep.mubr.f32.mxu1 %v4868_v62 }
 0x2b4   : > { %v4120_v53 = vpack.c.bf16 %v1968_v49, %v1961_v50 }
 0x2b5   : > { %3880 = vmatprep.mubr.f32.mxu0 %v1432_v51 }
 0x2b6   : > { %3881 = vmatmul.mubr.f32.vlgmr.msra.gmra.mrb[2].mxu0 %v1442_v52  ;;  %4121 = vmatprep.subr.bf16.mxu1 %v4120_v53 }
 0x2b7   : > { %3887 = vmatprep.mubr.f32.mxu0 %v1428_v33  ;;  %4123 = vmatpush3.bf16.msra.mxu1 %v4120_v53 }
 0x2b8   : > { %4125 = vmatprep.subr.bf16.mxu1 %v4124_v42  ;;  %4099 = vmatpush3.bf16.msra.mxu0 %v4096_v16 }
 0x2b9   : > { %4101 = vmatprep.subr.bf16.mxu0 %v4100_v17 }
 0x2ba   : > { %3930 = vmatmul.mubr.f32.vlgmr.msra.gmra.mrb[2].mxu1 %v4891_v21 }
 0x2bb   : > { %4127 = vmatpush3.bf16.msra.mxu1 %v4124_v42  ;;  %3936 = vmatprep.mubr.f32.mxu1 %v4871_v63 }
 0x2bc   : > { %4129 = vmatprep.subr.bf16.mxu1 %v4116_v35 }
 0x2be   : > { %3888 = vmatmul.mubr.f32.vlgmr.msra.gmra.mrb[2].mxu0 %v4900_v28 }
 0x2bf   : > { %3894 = vmatprep.mubr.f32.mxu0 %v1429_v38  ;;  %4103 = vmatpush3.bf16.msra.mxu0 %v4100_v17 }
 0x2c0   : > { %4105 = vmatprep.subr.bf16.mxu0 %v4880_v7 }
 0x2c2   : > { %3937 = vmatmul.mubr.f32.vlgmr.msra.gmra.mrb[2].mxu1 %v4894_v22 }
 0x2c3   : > { %4131 = vmatpush3.bf16.msra.mxu1 %v4116_v35  ;;  %3943 = vmatprep.mubr.f32.mxu1 %v4874_v0 }
 0x2c4   : > { %4133 = vmatprep.subr.bf16.mxu1 %v4132_v47 }
 0x2c6   : > { %3895 = vmatmul.mubr.f32.vlgmr.msra.gmra.mrb[2].mxu0 %v1439_v34 }
 0x2c7   : > { %3901 = vmatprep.mubr.f32.mxu0 %v1430_v43  ;;  %4107 = vmatpush3.bf16.msra.mxu0 %v4880_v7 }
 0x2c8   : > { %4109 = vmatprep.subr.bf16.mxu0 %v4885_v18 }
 0x2ca   : > { %3944 = vmatmul.mubr.f32.vlgmr.msra.gmra.mrb[2].mxu1 %v4897_v23 }
 0x2cb   : > { %4135 = vmatpush3.bf16.msra.mxu1 %v4132_v47  ;;  %3950 = vmatprep.mubr.f32.mxu1 %v4868_v62 }
 0x2cc   : > { %4137 = vmatprep.subr.bf16.mxu1 %v4116_v35 }
 0x2ce   : > { %3902 = vmatmul.mubr.f32.vlgmr.msra.gmra.mrb[2].mxu0 %v1440_v39 }
 0x2cf   : > { %3908 = vmatprep.mubr.f32.mxu0 %v1428_v33  ;;  %4111 = vmatpush3.bf16.msra.mxu0 %v4885_v18 }
 0x2d0   : > { %4113 = vmatprep.subr.bf16.mxu0 %v4880_v7 }
 0x2d2   : > { %3951 = vmatmul.mubr.f32.vlgmr.msra.gmra.mrb[2].mxu1 %v4891_v21 }
 0x2d3   : > { %4139 = vmatpush3.bf16.msra.mxu1 %v4116_v35  ;;  %3957 = vmatprep.mubr.f32.mxu1 %v4868_v62 }
 0x2d6   : > { %3909 = vmatmul.mubr.f32.vlgmr.msra.gmra.mrb[2].mxu0 %v4900_v28 }
 0x2d7   : > { %3915 = vmatprep.mubr.f32.mxu0 %v1428_v33  ;;  %4115 = vmatpush3.bf16.msra.mxu0 %v4880_v7  ;;  %v4148_v7 = vpack.c.bf16 %v2475_v60, %v2468_v59 }
 0x2d8   : > { %4141 = vmatprep.subr.bf16.mxu0 %v4929_v58 }
 0x2da   : > { %3958 = vmatmul.mubr.f32.vlgmr.msra.gmra.mrb[2].mxu1 %v4891_v21 }
 0x2db   : > { %4006 = vmatprep.mubr.f32.mxu1 %v4878_v6  ;;  %v4144_v6 = vpack.c.bf16 %v2478_v5, %v2471_v4 }
 0x2de   : > { %3916 = vmatmul.mubr.f32.vlgmr.msra.gmra.mrb[2].mxu0 %v4900_v28 }
 0x2df   : > { %4143 = vmatpush3.bf16.msra.mxu0 %v4929_v58 }
 0x2e0   : > { %4145 = vmatprep.subr.bf16.mxu0 %v4144_v6 }
 0x3ad   : > { %v3959_v9 = vpop.f32.mrb[2].mxu1 }
 0x3ae   : > { %v2377_v10 = vsel %vm336_vm0, %v3959_v9, 0  ;;  %v2885_v11 = vand.u32 4294901760, %v3959_v9  ;;  %v2361_v12 = vpop.f32.mrb[3].mxu1 }
 0x3af   : > { %v4936_v13 = vand.u32 4294901760, %v2377_v10  ;;  %v2374_v14 = vsel %vm336_vm0, %v2361_v12, 0  ;;  %v2882_v15 = vand.u32 4294901760, %v2361_v12 }
 0x3b0   : > { %v2977_v16 = vsub.f32 %v3959_v9, %v2885_v11  ;;  %v2446_v17 = vand.u32 4294901760, %v2374_v14 }
 0x3b1   : > { %v2457_v18 = vsub.f32 %v2377_v10, %v4936_v13  ;;  %v4164_v19 = vpack.c.bf16 %v2885_v11, %v2882_v15  ;;  %v2970_v20 = vsub.f32 %v2361_v12, %v2882_v15  ;;  %v3917_v24 = vpop.f32.mrb[2].mxu0 }
 0x3b2   : > { %v2978_v25 = vand.u32 4294901760, %v2977_v16  ;;  %v2447_v26 = vsub.f32 %v2374_v14, %v2446_v17  ;;  %v1853_v27 = vpop.f32.mrb[3].mxu0 }
 0x3b3   : > { %v2458_v28 = vand.u32 4294901760, %v2457_v18  ;;  %v2971_v29 = vand.u32 4294901760, %v2970_v20  ;;  %4165 = vmatprep.subr.bf16.mxu1 %v4164_v19  ;;  %v4172_v30 = vpack.c.bf16 %v2977_v16, %v2970_v20 }
 0x3b4   : > { %4167 = vmatpush3.bf16.msra.mxu1 %v4164_v19  ;;  %v2448_v31 = vand.u32 4294901760, %v2447_v26  ;;  %v2979_v32 = vsub.f32 %v2977_v16, %v2978_v25 }
 0x3b5   : > { %v2459_v33 = vsub.f32 %v2457_v18, %v2458_v28  ;;  %v2972_v35 = vsub.f32 %v2970_v20, %v2971_v29  ;;  %v4180_v40 = vpack.c.bf16 %v2978_v25, %v2971_v29 }
 0x3b6   : > { %v2449_v34 = vsub.f32 %v2447_v26, %v2448_v31  ;;  %v2980_v36 = vand.u32 4294901760, %v2979_v32 }
 0x3b7   : > { %4007 = vmatmul.mubr.f32.vlgmr.msra.gmra.mrb[4].mxu1 %v4906_v41  ;;  %v2973_v38 = vand.u32 4294901760, %v2972_v35  ;;  %v2460_v39 = vand.u32 4294901760, %v2459_v33  ;;  %v4575_v41 = vmov 1e-30  }
 0x3b8   : > { %v2450_v37 = vand.u32 4294901760, %v2449_v34  ;;  %4013 = vmatprep.mubr.f32.mxu1 %v4868_v62 }
 0x3b9   : > { %v4168_v42 = vpack.c.bf16 %v2980_v36, %v2973_v38 }
 0x3ba   : > { %3964 = vmatprep.mubr.f32.mxu0 %v2450_v37 }
 0x3bb   : > { %3965 = vmatmul.mubr.f32.vlgmr.msra.gmra.mrb[4].mxu0 %v2460_v39  ;;  %4169 = vmatprep.subr.bf16.mxu1 %v4168_v42 }
 0x3bc   : > { %3971 = vmatprep.mubr.f32.mxu0 %v2446_v17  ;;  %4171 = vmatpush3.bf16.msra.mxu1 %v4168_v42 }
 0x3bd   : > { %4147 = vmatpush3.bf16.msra.mxu0 %v4144_v6  ;;  %4173 = vmatprep.subr.bf16.mxu1 %v4172_v30 }
 0x3be   : > { %4149 = vmatprep.subr.bf16.mxu0 %v4148_v7 }
 0x3bf   : > { %4014 = vmatmul.mubr.f32.vlgmr.msra.gmra.mrb[4].mxu1 %v4891_v21 }
 0x3c0   : > { %4175 = vmatpush3.bf16.msra.mxu1 %v4172_v30  ;;  %4020 = vmatprep.mubr.f32.mxu1 %v4871_v63  ;;  %v3396_v63 = vadd.f32 1e-05, %v3917_v24 }
 0x3c1   : > { %4177 = vmatprep.subr.bf16.mxu1 %v4164_v19 }
 0x3c2   : > { %vm3402_vm1 = vcmp.lt.f32.partialorder %v3396_v63, 0.0 }
 0x3c3   : > { %3972 = vmatmul.mubr.f32.vlgmr.msra.gmra.mrb[4].mxu0 %v4936_v13  ;;  %v3404_v43 = vsel %vm3402_vm1, -1e-30, %v4575_v41 }
 0x3c4   : > { %3978 = vmatprep.mubr.f32.mxu0 %v2447_v26  ;;  %4151 = vmatpush3.bf16.msra.mxu0 %v4148_v7 }
 0x3c5   : > { %4153 = vmatprep.subr.bf16.mxu0 %v4929_v58 }
 0x3c7   : > { %4021 = vmatmul.mubr.f32.vlgmr.msra.gmra.mrb[4].mxu1 %v4894_v22  ;;  %v3398_v22 = vand.u32 2147483647, %v3396_v63 }
 0x3c8   : > { %4179 = vmatpush3.bf16.msra.mxu1 %v4164_v19  ;;  %4027 = vmatprep.mubr.f32.mxu1 %v4874_v0  ;;  %v3395_v0 = vadd.f32 1e-05, %v1853_v27 }
 0x3c9   : > { %4181 = vmatprep.subr.bf16.mxu1 %v4180_v40  ;;  %vm3400_vm3 = vcmp.lt.f32.partialorder %v3398_v22, 1e-30 }
 0x3ca   : > { %vm3401_vm2 = vcmp.lt.f32.partialorder %v3395_v0, 0.0  ;;  %v3406_v44 = vsel %vm3400_vm3, %v3404_v43, %v3396_v63 }
 0x3cb   : > { %3979 = vmatmul.mubr.f32.vlgmr.msra.gmra.mrb[4].mxu0 %v2457_v18  ;;  %4342 = vrcp.f32 %v3406_v44 }
 0x3cc   : > { %3985 = vmatprep.mubr.f32.mxu0 %v2448_v31  ;;  %4155 = vmatpush3.bf16.msra.mxu0 %v4929_v58 }
 0x3cd   : > { %4157 = vmatprep.subr.bf16.mxu0 %v4933_v8 }
 0x3cf   : > { %4028 = vmatmul.mubr.f32.vlgmr.msra.gmra.mrb[4].mxu1 %v4897_v23  ;;  %v3397_v23 = vand.u32 2147483647, %v3395_v0 }
 0x3d0   : > { %4183 = vmatpush3.bf16.msra.mxu1 %v4180_v40  ;;  %4034 = vmatprep.mubr.f32.mxu1 %v4868_v62 }
 0x3d1   : > { %4185 = vmatprep.subr.bf16.mxu1 %v4164_v19  ;;  %vm3399_vm4 = vcmp.lt.f32.partialorder %v3397_v23, 1e-30 }
 0x3d3   : > { %3986 = vmatmul.mubr.f32.vlgmr.msra.gmra.mrb[4].mxu0 %v2458_v28 }
 0x3d4   : > { %3992 = vmatprep.mubr.f32.mxu0 %v2446_v17  ;;  %4159 = vmatpush3.bf16.msra.mxu0 %v4933_v8 }
 0x3d5   : > { %4161 = vmatprep.subr.bf16.mxu0 %v4929_v58  ;;  %v4343_v46 = vpop.eup %4342 }
 0x3d6   : > { %v3410_v48 = vmul.f32 %v4343_v46, %v3406_v44 }
 0x3d7   : > { %4035 = vmatmul.mubr.f32.vlgmr.msra.gmra.mrb[4].mxu1 %v4891_v21 }
 0x3d8   : > { %4187 = vmatpush3.bf16.msra.mxu1 %v4164_v19  ;;  %4041 = vmatprep.mubr.f32.mxu1 %v4868_v62  ;;  %v3403_v62 = vsel %vm3401_vm2, -1e-30, %v4575_v41  ;;  %v3412_v54 = vsub.f32 2.0, %v3410_v48 }
 0x3d9   : > { %v3405_v45 = vsel %vm3399_vm4, %v3403_v62, %v3395_v0 }
 0x3da   : > { %4344 = vrcp.f32 %v3405_v45  ;;  %v3414_v1 = vmul.f32 %v4343_v46, %v3412_v54 }
 0x3db   : > { %3993 = vmatmul.mubr.f32.vlgmr.msra.gmra.mrb[4].mxu0 %v4936_v13 }
 0x3dc   : > { %3999 = vmatprep.mubr.f32.mxu0 %v2446_v17  ;;  %4163 = vmatpush3.bf16.msra.mxu0 %v4929_v58 }
 0x3df   : > { %4042 = vmatmul.mubr.f32.vlgmr.msra.gmra.mrb[4].mxu1 %v4891_v21 }
 0x3e3   : > { %4000 = vmatmul.mubr.f32.vlgmr.msra.gmra.mrb[4].mxu0 %v4936_v13 }
 0x3e4   : > { %v4345_v47 = vpop.eup %4344 }
 0x3e5   : > { %v3409_v50 = vmul.f32 %v4345_v47, %v3405_v45 }
 0x3e7   : > { %v3411_v56 = vsub.f32 2.0, %v3409_v50 }
 0x3e9   : > { %v3413_v4 = vmul.f32 %v4345_v47, %v3411_v56 }
 0x4b2   : > { %v4043_v21 = vpop.f32.mrb[4].mxu1 }
 0x4b3   : > { %v3373_v49 = vpop.f32.mrb[5].mxu1 }
 0x4b6   : > { %v4001_v51 = vpop.f32.mrb[4].mxu0 }
 0x4b7   : > { %v3384_v52 = vsub.f32 0.0, %v4001_v51  ;;  %v2871_v53 = vpop.f32.mrb[5].mxu0 }
 0x4b8   : > { %v3383_v55 = vsub.f32 0.0, %v2871_v53 }
 0x4b9   : > { %vm3386_vm5 = vcmp.gt.f32.partialorder %v3384_v52, 0.0  ;;  %vm3388_vm6 = vcmp.lt.f32.partialorder %v3384_v52, 0.0 }
 0x4ba   : > { %v3390_v58 = vsel %vm3388_vm6, -1.0, %v4576_v57  ;;  %vm3385_vm7 = vcmp.gt.f32.partialorder %v3383_v55, 0.0  ;;  %vm3387_vm8 = vcmp.lt.f32.partialorder %v3383_v55, 0.0 }
 0x4bb   : > { %v3392_v59 = vsel %vm3386_vm5, 1.0, %v3390_v58  ;;  %v3389_v60 = vsel %vm3387_vm8, -1.0, %v4576_v57 }
 0x4bc   : > { %v3394_v61 = vmul.f32 %v4043_v21, %v3392_v59  ;;  %v3391_v2 = vsel %vm3385_vm7, 1.0, %v3389_v60 }
 0x4bd   : > { %v3393_v3 = vmul.f32 %v3391_v2, %v3373_v49 }
 0x4be   : > { %v4962_v5 = vmul.f32 %v3414_v1, %v3394_v61 }
 0x4bf   : > { %v4964_v6 = vmul.f32 %v3413_v4, %v3393_v3 }
 0x4c0   : > { %v3418_v7 = vand.u32 2147483647, %v4962_v5  ;;  %vm3470_vm3 = vcmp.lt.f32.partialorder %v4962_v5, 0.0  ;;  %vm3468_vm4 = vcmp.gt.f32.partialorder %v4962_v5, 0.0 }
 0x4c1   : > { %v4968_v8 = vand.u32 2147483647, %v4964_v6  ;;  %vm3469_vm5 = vcmp.lt.f32.partialorder %v4964_v6, 0.0  ;;  %v3472_v48 = vsel %vm3470_vm3, -1.0, %v4576_v57  ;;  %vm3467_vm6 = vcmp.gt.f32.partialorder %v4964_v6, 0.0 }
 0x4c2   : > { %vm3420_vm9 = vcmp.gt.f32.partialorder %v3418_v7, 2.4142137  ;;  %vm3422_vm10 = vcmp.gt.f32.partialorder %v3418_v7, 0.41421357  ;;  %v3434_v9 = vadd.f32 1.0, %v3418_v7  ;;  %v3636_v17 = vadd.f32 -1.0, %v3418_v7 }
 0x4c3   : > { %vm3424_vm12 = vmxor %vm3420_vm9, %vm4577_vm11  ;;  %vm3419_vm13 = vcmp.gt.f32.partialorder %v4968_v8, 2.4142137  ;;  %vm3421_vm14 = vcmp.gt.f32.partialorder %v4968_v8, 0.41421357  ;;  %v3433_v11 = vadd.f32 1.0, %v4968_v8  ;;  %v3635_v20 = vadd.f32 -1.0, %v4968_v8 }
 0x4c4   : > { %vm4973_vm15 = vmand %vm3422_vm10, %vm3424_vm12  ;;  %v3471_v54 = vsel %vm3469_vm5, -1.0, %v4576_v57  ;;  %v3474_v56 = vsel %vm3468_vm4, 1.0, %v3472_v48 }
 0x4c5   : > { %v3436_v12 = vsel %vm4973_vm15, %v3434_v9, 1.0  ;;  %vm3423_vm1 = vmxor %vm3419_vm13, %vm4577_vm11  ;;  %v3430_v25 = vsel %vm4973_vm15, %v3636_v17, %v3418_v7  ;;  %v3450_v46 = vsel %vm4973_vm15, 0.7853982, %v4576_v57  ;;  %v3473_v61 = vsel %vm3467_vm6, 1.0, %v3471_v54 }
 0x4c6   : > { %v3438_v13 = vsel %vm3420_vm9, %v3418_v7, %v3436_v12  ;;  %vm4983_vm2 = vmand %vm3421_vm14, %vm3423_vm1  ;;  %v3432_v31 = vsel %vm3420_vm9, -1.0, %v3430_v25  ;;  %v3452_v52 = vsel %vm3420_vm9, 1.5707964, %v3450_v46 }
 0x4c7   : > { %4346 = vrcp.f32 %v3438_v13  ;;  %v3435_v15 = vsel %vm4983_vm2, %v3433_v11, 1.0  ;;  %v3429_v29 = vsel %vm4983_vm2, %v3635_v20, %v4968_v8  ;;  %v3449_v50 = vsel %vm4983_vm2, 0.7853982, %v4576_v57 }
 0x4c8   : > { %v3437_v16 = vsel %vm3419_vm13, %v4968_v8, %v3435_v15  ;;  %v3431_v34 = vsel %vm3419_vm13, -1.0, %v3429_v29  ;;  %v3451_v58 = vsel %vm3419_vm13, 1.5707964, %v3449_v50 }
 0x4c9   : > { %4348 = vrcp.f32 %v3437_v16 }
 0x4d1   : > { %v4347_v18 = vpop.eup %4346 }
 0x4d2   : > { %v3442_v19 = vmul.f32 %v4347_v18, %v3438_v13 }
 0x4d3   : > { %v4349_v24 = vpop.eup %4348 }
 0x4d4   : > { %v3444_v26 = vsub.f32 2.0, %v3442_v19  ;;  %v3441_v27 = vmul.f32 %v4349_v24, %v3437_v16 }
 0x4d6   : > { %v3446_v28 = vmul.f32 %v4347_v18, %v3444_v26  ;;  %v3443_v30 = vsub.f32 2.0, %v3441_v27 }
 0x4d8   : > { %v3448_v32 = vmul.f32 %v3446_v28, %v3432_v31  ;;  %v3445_v33 = vmul.f32 %v4349_v24, %v3443_v30 }
 0x4da   : > { %v3454_v35 = vmul.f32 %v3448_v32, %v3448_v32  ;;  %v3447_v36 = vmul.f32 %v3445_v33, %v3431_v34 }
 0x4dc   : > { %v3456_v37 = vmul.f32 0.080537446, %v3454_v35  ;;  %v3453_v38 = vmul.f32 %v3447_v36, %v3447_v36 }
 0x4de   : > { %v3638_v39 = vadd.f32 -0.13877685, %v3456_v37  ;;  %v3455_v40 = vmul.f32 0.080537446, %v3453_v38 }
 0x4e0   : > { %v3460_v42 = vmul.f32 %v3638_v39, %v3454_v35  ;;  %v3637_v63 = vadd.f32 -0.13877685, %v3455_v40 }
 0x4e2   : > { %v3462_v0 = vadd.f32 0.19977711, %v3460_v42  ;;  %v3459_v22 = vmul.f32 %v3637_v63, %v3453_v38 }
 0x4e4   : > { %v3464_v23 = vmul.f32 %v3462_v0, %v3454_v35  ;;  %v3461_v41 = vadd.f32 0.19977711, %v3459_v22 }
 0x4e6   : > { %v3640_v43 = vadd.f32 -0.3333295, %v3464_v23  ;;  %v3463_v62 = vmul.f32 %v3461_v41, %v3453_v38 }
 0x4e8   : > { %v3476_v44 = vmul.f32 %v3640_v43, %v3454_v35  ;;  %v3639_v45 = vadd.f32 -0.3333295, %v3463_v62 }
 0x4ea   : > { %v3478_v47 = vmul.f32 %v3476_v44, %v3448_v32  ;;  %v3475_v21 = vmul.f32 %v3639_v45, %v3453_v38 }
 0x4ec   : > { %v3480_v49 = vadd.f32 %v3478_v47, %v3448_v32  ;;  %v3477_v51 = vmul.f32 %v3475_v21, %v3447_v36 }
 0x4ee   : > { %v3482_v53 = vadd.f32 %v3480_v49, %v3452_v52  ;;  %v3479_v55 = vadd.f32 %v3477_v51, %v3447_v36 }
 0x4f0   : > { %v3484_v59 = vmul.f32 %v3482_v53, %v3474_v56  ;;  %v3481_v60 = vadd.f32 %v3479_v55, %v3451_v58 }
 0x4f2   : > { %vm3486_vm7 = vcmp.lt.f32.partialorder %v3484_v59, 0.0  ;;  %v3488_v1 = vadd.f32 3.1415927, %v3484_v59  ;;  %v3483_v2 = vmul.f32 %v3481_v60, %v3473_v61 }
 0x4f4   : > { %v3490_v3 = vsel %vm3486_vm7, %v3488_v1, %v3484_v59  ;;  %vm3485_vm8 = vcmp.lt.f32.partialorder %v3483_v2, 0.0  ;;  %v3487_v57 = vadd.f32 3.1415927, %v3483_v2 }
 0x4f5   : > { %3492 = vst.msk [vmem:[%s327_s10 + $0x8] sm:$0xff] %vm336_vm0, %v3490_v3 }
 0x4f6   : > { %v3489_v4 = vsel %vm3485_vm8, %v3487_v57, %v3483_v2 }
 0x4f7   : > { %3491 = vst.msk [vmem:[%s327_s10] sm:$0xff] %vm336_vm0, %v3489_v4 }
 0x4f8   : > { %4505 = shalt.err (!%p4502_p13)
}
 0x4f9   : > { %s4506_s27 = scalar_lea.hbm %s5022_s14, 256  ;;  %s4510_s9 = scalar_lea.hbm %s5076_s6, 512 }
 0x4fa   : > { %p4507_p9 = scmp.ne.s32.totalorder %s5022_s14, %s4506_s27  ;;  %p4511_p4 = scmp.lt.u32.totalorder %s5022_s14, %s5076_s6 }
 0x4fb   : > { %p4512_p8 = scmp.lt.u32.totalorder %s4510_s9, %s4506_s27  ;;  %p4514_p3 = scmp.lt.u32.totalorder %s4506_s27, %s5022_s14 }
 0x4fc   : > { %p4508_p0 = pnand %p4507_p9, %p4787_p10 }
 0x4fd   : > { %p4513_p6 = por %p4512_p8, %p4511_p4 }
 0x4fe   : > { %p4509_p11 = pneg %p4508_p0 }
 0x4ff   : > { %p4515_p5 = por %p4514_p3, %p4513_p6 }
 0x501   : > { %p4516_p7 = pnand %p4515_p5, %p4509_p11 }
 0x503   : > { %4519 = shalt.err (!%p4516_p7)
}
 0x504   : > { %s4579_s17 = smov 128   ;;  %s4580_s19 = smov 8  }
 0x505   : > { %4266 = dma.vmem_to_hbm [thread:$0]  (%p4787_p10), %s5024_s8, 256, %s5022_s14, %s3494_s25, %s4579_s17, %s4579_s17, %s4580_s19  }
 0x506 PF: > { %s3522_s26 = sand.u32 1, %s4554_s21   ;;  %p5098_p12 = scmp.ne.s32.totalorder %s5081_s28, 0 }
 0x507   : > { %p5099_p1 = scmp.ge.s32.totalorder %s4566_s24, 2  ;;  %s3523_s20 = scalar_lea.sflag [#allocation4], %s3522_s26 }
 0x509   : > { %p4286_p2 = pnand %p5099_p1, %p5098_p12 }
 0x50b   : > { %4549 = dma.done.wait (!%p4286_p2), %s3523_s20, 256  }
 0x50c   : > { %4551 = vsyncadd (!%p4286_p2), %s3523_s20, 4294967040  ;;  %p21_p13 = scmp.ge.s32.totalorder %s4777_s18, 4   ;;  %s5100_s21 = smov %s4558_s22 }
 0x50d   : > { %s5101_s22 = smov %s4562_s23  ;;  %s5102_s23 = smov %s4793_s16 }
 0x50e   : > { %s5103_s24 = smov %s4777_s18  ;;  %23 = sbr.rel (!%p21_p13) target bundleno = 7 (0x7), region = 105 }
 0x515   :  { %3528 = vsyncpa [#allocation3], 1 }
 0x516   :  { %3530 = vsyncpa [#allocation3 + $0x1], 1 }
 0x517   :  { %3531 = vsyncpa [#allocation6], 1 }
 0x518   :  { %3532 = vsyncpa [#allocation9], 1 }
 0x519   :  { %3533 = vsyncpa [#allocation4], 1 }
 0x51a   :  { %3535 = vsyncpa [#allocation4 + $0x1], 1 }

</bundles_post_ra>
